<compile_context>
chip_gen: v7x
topology: tpu7x:2x2x1
jax: 0.10.0
libtpu: 0.0.40
codegen_flags: <defaults>
</compile_context>

<pallas_src>
import functools

import jax
import jax.numpy as jnp
from jax.experimental import pallas as pl
from jax.experimental.pallas import tpu as pltpu


def _batch_renorm_kernel(x_ref, rm_ref, rv_ref,
                         out_ref, new_rm_ref, new_rv_ref,
                         *, eps, momentum, r_max, d_max, n):
    x = x_ref[...].astype(jnp.float32)       # (N, TC)
    rm = rm_ref[...].astype(jnp.float32)     # (1, TC) running_mean tile
    rv = rv_ref[...].astype(jnp.float32)     # (1, TC) running_var tile

    # batch statistics (reduce over batch / sublane axis)
    mean = jnp.mean(x, axis=0, keepdims=True)                          # (1, TC)
    centered = x - mean
    var = jnp.sum(centered * centered, axis=0, keepdims=True) * (1.0 / (n - 1.0)) + eps

    # Per-feature (row) math only -- cheap.  Exact reciprocal (not approx) so
    # results stay within 1e-5 of the reference divide.
    inv_var = 1.0 / var                                                # (1, TC)
    r = jnp.clip(var / rv, 1.0 / r_max, r_max)                         # (1, TC)
    d = jnp.clip((mean - rm) / rv, -d_max, d_max)                      # (1, TC)
    scale = r * inv_var                                                # == r / var

    # Hot path over the full (N, TC) tile: one broadcast multiply-add.
    # bn * r + d == centered * (r / var) + d
    out_ref[...] = (centered * scale + d).astype(out_ref.dtype)

    # running-buffer updates (mean.data.mean(0) == mean, var.data.mean(0) == var)
    new_rm_ref[...] = (rm + momentum * (mean - rm)).astype(new_rm_ref.dtype)
    new_rv_ref[...] = (rv + momentum * (var - rv)).astype(new_rv_ref.dtype)


def batch_renorm1d(x, running_mean, running_var, itr, *,
                   r_d_func, eps=1e-5, momentum=0.1):
    """Returns (output, new_running_mean, new_running_var)."""
    n, c = x.shape
    assert running_mean.shape == (c,) and running_var.shape == (c,)
    r_max, d_max = r_d_func(itr)   # glue: schedule evaluated in plain Python

    # --- lane padding: keep output stores lane-dense (multiples of 128) ------
    c_pad = 128 * pl.cdiv(c, 128)
    # largest lane tile <= 512 that divides the padded width
    tc = next(t for t in (512, 256, 128) if c_pad % t == 0)

    if c_pad != c:
        pad = c_pad - c
        x_p = jnp.pad(x, ((0, 0), (0, pad)))
        rm_p = jnp.pad(running_mean, (0, pad)).reshape(1, c_pad)
        # pad running_var with ones so padded lanes never divide by zero
        rv_p = jnp.pad(running_var, (0, pad), constant_values=1.0).reshape(1, c_pad)
    else:
        x_p = x
        rm_p = running_mean.reshape(1, c_pad)
        rv_p = running_var.reshape(1, c_pad)

    kernel = functools.partial(
        _batch_renorm_kernel,
        eps=float(eps), momentum=float(momentum),
        r_max=float(r_max), d_max=float(d_max), n=float(n))

    # Explicit VMEM budget: double-buffered x + out tiles plus the (1, TC)
    # stat rows, with generous headroom; capped well below v7x's 64 MiB.
    per_step_bytes = (2 * n * tc + 4 * tc) * 4
    vmem_limit_bytes = int(min(48 * 1024 * 1024,
                               max(4 * 1024 * 1024, 8 * per_step_bytes)))

    # TODO(synk): batch dim N is kept in a single block; for very large N add a
    # second "arbitrary" grid axis with sum / sum-of-squares accumulation.
    grid = (c_pad // tc,)

    out, new_rm, new_rv = pl.pallas_call(
        kernel,
        grid=grid,
        out_shape=(
            jax.ShapeDtypeStruct((n, c_pad), x.dtype),
            jax.ShapeDtypeStruct((1, c_pad), running_mean.dtype),
            jax.ShapeDtypeStruct((1, c_pad), running_var.dtype),
        ),
        in_specs=[
            pl.BlockSpec((n, tc), lambda i: (0, i)),
            pl.BlockSpec((1, tc), lambda i: (0, i)),
            pl.BlockSpec((1, tc), lambda i: (0, i)),
        ],
        out_specs=(
            pl.BlockSpec((n, tc), lambda i: (0, i)),
            pl.BlockSpec((1, tc), lambda i: (0, i)),
            pl.BlockSpec((1, tc), lambda i: (0, i)),
        ),
        # in-place running-buffer update (padded temporaries are donated)
        input_output_aliases={1: 1, 2: 2},
        compiler_params=pltpu.CompilerParams(
            dimension_semantics=("parallel",),
            vmem_limit_bytes=vmem_limit_bytes),
    )(x_p, rm_p, rv_p)

    if c_pad != c:
        out = out[:, :c]
        new_rm = new_rm[:, :c]
        new_rv = new_rv[:, :c]
    return out, new_rm.reshape(c), new_rv.reshape(c)


def _reference(x, rm, rv, itr, r_d_func, eps=1e-5, momentum=0.1):
    # plain-JAX mirror of the PyTorch forward, for correctness checking
    mean = jnp.mean(x, axis=0, keepdims=True)
    var = jnp.var(x, axis=0, ddof=1, keepdims=True) + eps
    bn = (x - mean) / var
    r_max, d_max = r_d_func(itr)
    r = jnp.clip(var / rv[None, :], 1.0 / r_max, r_max)
    d = jnp.clip((mean - rm[None, :]) / rv[None, :], -d_max, d_max)
    new_rm = rm + momentum * (mean[0] - rm)
    new_rv = rv + momentum * (var[0] - rv)
    return bn * r + d, new_rm, new_rv


if __name__ == "__main__":
    key = jax.random.PRNGKey(0)
    N, C = 8, 32  # batch=8, num_features=32

    kx, kw = jax.random.split(key)
    x = jax.random.normal(kx, (N, C), dtype=jnp.float32)

    # buffers as in reset_parameters()
    running_mean = jnp.zeros((C,), jnp.float32)
    running_var = jnp.ones((C,), jnp.float32)

    # affine parameters: initialized per __init__ (uniform weight, zero bias)
    # but — matching the reference forward — they are never applied.
    weight = jax.random.uniform(kw, (C,), dtype=jnp.float32)
    bias = jnp.zeros((C,), jnp.float32)

    def r_d_func(itr):
        # deterministic renorm schedule: r_max ramps 1->3, d_max ramps 0->5
        t = min(itr / 1000.0, 1.0)
        return 1.0 + 2.0 * t, 5.0 * t

    itr = 100
    out, new_rm, new_rv = batch_renorm1d(
        x, running_mean, running_var, itr, r_d_func=r_d_func)
    jax.block_until_ready((out, new_rm, new_rv))

    ref_out, ref_rm, ref_rv = _reference(
        x, running_mean, running_var, itr, r_d_func)
    assert jnp.allclose(out, ref_out, atol=1e-5, rtol=1e-5)
    assert jnp.allclose(new_rm, ref_rm, atol=1e-6)
    assert jnp.allclose(new_rv, ref_rv, atol=1e-6)

    print("KERNEL_OK")
</pallas_src>

<mosaic_0001>
module attributes {stable_mosaic.version = 11 : i64} {
  func.func @_batch_renorm_kernel(%arg0: i32, %arg1: memref<8x128xf32, #tpu.memory_space<vmem>>, %arg2: memref<1x128xf32, #tpu.memory_space<vmem>>, %arg3: memref<1x128xf32, #tpu.memory_space<vmem>>, %arg4: memref<8x128xf32, #tpu.memory_space<vmem>>, %arg5: memref<1x128xf32, #tpu.memory_space<vmem>>, %arg6: memref<1x128xf32, #tpu.memory_space<vmem>>) attributes {dimension_semantics = [#tpu.dimension_semantics<parallel>], iteration_bounds = array<i64: 1>, scalar_prefetch = 0 : i64, scratch_operands = 0 : i64, tpu.core_type = #tpu.core_type<tc>, window_params = [{transform_indices = @transform_0, window_bounds = array<i64: 8, 128>}, {transform_indices = @transform_1, window_bounds = array<i64: 1, 128>}, {transform_indices = @transform_2, window_bounds = array<i64: 1, 128>}, {transform_indices = @transform_3, window_bounds = array<i64: 8, 128>}, {transform_indices = @transform_4, window_bounds = array<i64: 1, 128>}, {transform_indices = @transform_5, window_bounds = array<i64: 1, 128>}]} {
    %c0 = arith.constant 0 : index
    %c0_0 = arith.constant 0 : index
    %0 = vector.load %arg1[%c0, %c0_0] : memref<8x128xf32, #tpu.memory_space<vmem>>, vector<8x128xf32>
    %c0_1 = arith.constant 0 : index
    %c0_2 = arith.constant 0 : index
    %1 = vector.load %arg2[%c0_1, %c0_2] : memref<1x128xf32, #tpu.memory_space<vmem>>, vector<1x128xf32>
    %c0_3 = arith.constant 0 : index
    %c0_4 = arith.constant 0 : index
    %2 = vector.load %arg3[%c0_3, %c0_4] : memref<1x128xf32, #tpu.memory_space<vmem>>, vector<1x128xf32>
    %cst = arith.constant dense<0.000000e+00> : vector<128xf32>
    %3 = vector.multi_reduction <add>, %0, %cst [0] : vector<8x128xf32> to vector<128xf32>
    %4 = vector.shape_cast %3 : vector<128xf32> to vector<1x128xf32>
    %cst_5 = arith.constant 8.000000e+00 : f32
    %5 = vector.broadcast %cst_5 : f32 to vector<1x128xf32>
    %6 = arith.divf %4, %5 : vector<1x128xf32>
    %7 = vector.broadcast %6 : vector<1x128xf32> to vector<8x128xf32>
    %8 = arith.subf %0, %7 : vector<8x128xf32>
    %9 = arith.mulf %8, %8 : vector<8x128xf32>
    %cst_6 = arith.constant dense<0.000000e+00> : vector<128xf32>
    %10 = vector.multi_reduction <add>, %9, %cst_6 [0] : vector<8x128xf32> to vector<128xf32>
    %11 = vector.shape_cast %10 : vector<128xf32> to vector<1x128xf32>
    %cst_7 = arith.constant 0.142857149 : f32
    %12 = vector.broadcast %cst_7 : f32 to vector<1x128xf32>
    %13 = arith.mulf %11, %12 : vector<1x128xf32>
    %cst_8 = arith.constant 9.99999974E-6 : f32
    %14 = vector.broadcast %cst_8 : f32 to vector<1x128xf32>
    %15 = arith.addf %13, %14 : vector<1x128xf32>
    %cst_9 = arith.constant 1.000000e+00 : f32
    %16 = vector.broadcast %cst_9 : f32 to vector<1x128xf32>
    %17 = arith.divf %16, %15 : vector<1x128xf32>
    %18 = arith.divf %15, %2 : vector<1x128xf32>
    %cst_10 = arith.constant 0.833333313 : f32
    %cst_11 = arith.constant 1.200000e+00 : f32
    %19 = vector.broadcast %cst_10 : f32 to vector<1x128xf32>
    %20 = arith.maximumf %19, %18 : vector<1x128xf32>
    %21 = vector.broadcast %cst_11 : f32 to vector<1x128xf32>
    %22 = arith.minimumf %21, %20 : vector<1x128xf32>
    %23 = arith.subf %6, %1 : vector<1x128xf32>
    %24 = arith.divf %23, %2 : vector<1x128xf32>
    %cst_12 = arith.constant -5.000000e-01 : f32
    %cst_13 = arith.constant 5.000000e-01 : f32
    %25 = vector.broadcast %cst_12 : f32 to vector<1x128xf32>
    %26 = arith.maximumf %25, %24 : vector<1x128xf32>
    %27 = vector.broadcast %cst_13 : f32 to vector<1x128xf32>
    %28 = arith.minimumf %27, %26 : vector<1x128xf32>
    %29 = arith.mulf %22, %17 : vector<1x128xf32>
    %30 = vector.broadcast %29 : vector<1x128xf32> to vector<8x128xf32>
    %31 = arith.mulf %8, %30 : vector<8x128xf32>
    %32 = vector.broadcast %28 : vector<1x128xf32> to vector<8x128xf32>
    %33 = arith.addf %31, %32 : vector<8x128xf32>
    %c0_14 = arith.constant 0 : index
    %c0_15 = arith.constant 0 : index
    %34 = vector.load %arg4[%c0_14, %c0_15] : memref<8x128xf32, #tpu.memory_space<vmem>>, vector<8x128xf32>
    tpu.vector_store %arg4[%c0_14, %c0_15], %33 {strides = array<i32>} : memref<8x128xf32, #tpu.memory_space<vmem>>, vector<8x128xf32>,
    %35 = arith.subf %6, %1 : vector<1x128xf32>
    %cst_16 = arith.constant 1.000000e-01 : f32
    %36 = vector.broadcast %cst_16 : f32 to vector<1x128xf32>
    %37 = arith.mulf %36, %35 : vector<1x128xf32>
    %38 = arith.addf %1, %37 : vector<1x128xf32>
    %c0_17 = arith.constant 0 : index
    %c0_18 = arith.constant 0 : index
    %39 = vector.load %arg5[%c0_17, %c0_18] : memref<1x128xf32, #tpu.memory_space<vmem>>, vector<1x128xf32>
    tpu.vector_store %arg5[%c0_17, %c0_18], %38 {strides = array<i32>} : memref<1x128xf32, #tpu.memory_space<vmem>>, vector<1x128xf32>,
    %40 = arith.subf %15, %2 : vector<1x128xf32>
    %cst_19 = arith.constant 1.000000e-01 : f32
    %41 = vector.broadcast %cst_19 : f32 to vector<1x128xf32>
    %42 = arith.mulf %41, %40 : vector<1x128xf32>
    %43 = arith.addf %2, %42 : vector<1x128xf32>
    %c0_20 = arith.constant 0 : index
    %c0_21 = arith.constant 0 : index
    %44 = vector.load %arg6[%c0_20, %c0_21] : memref<1x128xf32, #tpu.memory_space<vmem>>, vector<1x128xf32>
    tpu.vector_store %arg6[%c0_20, %c0_21], %43 {strides = array<i32>} : memref<1x128xf32, #tpu.memory_space<vmem>>, vector<1x128xf32>,
    return
  }
  func.func @transform_0(%arg0: i32) -> (i32, i32) {
    %c0_i32 = arith.constant 0 : i32
    %c0_i32_0 = arith.constant 0 : i32
    return %c0_i32, %arg0 : i32, i32
  }
  func.func @transform_1(%arg0: i32) -> (i32, i32) {
    %c0_i32 = arith.constant 0 : i32
    %c0_i32_0 = arith.constant 0 : i32
    return %c0_i32, %arg0 : i32, i32
  }
  func.func @transform_2(%arg0: i32) -> (i32, i32) {
    %c0_i32 = arith.constant 0 : i32
    %c0_i32_0 = arith.constant 0 : i32
    return %c0_i32, %arg0 : i32, i32
  }
  func.func @transform_3(%arg0: i32) -> (i32, i32) {
    %c0_i32 = arith.constant 0 : i32
    %c0_i32_0 = arith.constant 0 : i32
    return %c0_i32, %arg0 : i32, i32
  }
  func.func @transform_4(%arg0: i32) -> (i32, i32) {
    %c0_i32 = arith.constant 0 : i32
    %c0_i32_0 = arith.constant 0 : i32
    return %c0_i32, %arg0 : i32, i32
  }
  func.func @transform_5(%arg0: i32) -> (i32, i32) {
    %c0_i32 = arith.constant 0 : i32
    %c0_i32_0 = arith.constant 0 : i32
    return %c0_i32, %arg0 : i32, i32
  }
}

</mosaic_0001>

<bundles_post_ra>
// kernel: tpu_custom_call.1
= control target key start
LH: loop header
LB: loop body
LE: loop exit
PB: predicated region body
PF: predicated region fallthrough
CT: control target
= control target key end

     0   :  { %11 = vsyncpa [#allocation3], 0  ;;  %s367_s0 = inlined_call_operand.vmem [shape: f32[8,128], index: 0, kind: input, shape index: {}]   ;;  %s368_s1 = inlined_call_operand.hbm [shape: f32[1,128], index: 1, kind: input, shape index: {}, may-alias: {1,4}]   ;;  %s369_s2 = inlined_call_operand.hbm [shape: f32[1,128], index: 2, kind: input, shape index: {}, may-alias: {2,5}]   ;;  %s370_s3 = inlined_call_operand.hbm [shape: f32[8,128], index: 3, kind: output, shape index: {0}]   ;;  %s371_s4 = inlined_call_operand.hbm [shape: f32[1,128], index: 4, kind: output, shape index: {1}, may-alias: {1,4}]   ;;  %s372_s5 = inlined_call_operand.hbm [shape: f32[1,128], index: 5, kind: output, shape index: {2}, may-alias: {2,5}]  }
   0x1   :  { %12 = vsyncpa [#allocation6], 0 }
   0x2   :  { %13 = vsyncpa [#allocation4], 0 }
   0x3   :  { %14 = vsyncpa [#allocation9], 0  ;;  %s264_s18 = smov [#allocation2]   ;;  %s265_s20 = smov [#allocation5]  }
   0x4   :  { %s23_s19 = sshll.u32 %s264_s18, 4  ;;  %s33_s21 = sshll.u32 %s265_s20, 4  ;;  %s24_s19 = int_to_ptr.vmem [resolvable:$true] %s23_s19  ;;  %s34_s21 = int_to_ptr.vmem [resolvable:$true] %s33_s21 }
   0x5   :  { %s146_s24 = scalar_lea.hbm %s368_s1, 16 }
   0x6   :  { %p147_p0 = scmp.ne.s32.totalorder %s368_s1, %s146_s24  ;;  %p150_p1 = scmp.lt.u32.totalorder %s146_s24, %s368_s1 }
   0x8   :  { %p152_p2 = pnand %p150_p1, %p147_p0 }
   0xa   :  { %155 = shalt.err (!%p152_p2)
}
   0xb   :  { %s156_s29 = scalar_lea.vmem %s24_s19, 16  ;;  %s160_s30 = scalar_lea.vmem %s24_s19, 32 }
   0xc   :  { %p157_p3 = scmp.ne.s32.totalorder %s24_s19, %s156_s29  ;;  %p161_p4 = scmp.lt.s32.totalorder %s24_s19, %s24_s19 }
   0xd   :  { %p162_p5 = scmp.lt.s32.totalorder %s160_s30, %s156_s29 }
   0xf   :  { %p163_p6 = por %p162_p5, %p161_p4 }
  0x11   :  { %p164_p7 = pnand %p163_p6, %p157_p3 }
  0x13   :  { %167 = shalt.err (!%p164_p7)
}
  0x14   :  { %26 = dma.hbm_to_vmem [thread:$0]  %s368_s1, 16, %s24_s19, [#allocation3]  }
  0x15   :  { %s168_s10 = scalar_lea.hbm %s369_s2, 16 }
  0x16   :  { %p169_p8 = scmp.ne.s32.totalorder %s369_s2, %s168_s10  ;;  %p172_p9 = scmp.lt.u32.totalorder %s168_s10, %s369_s2 }
  0x18   :  { %p174_p10 = pnand %p172_p9, %p169_p8 }
  0x1a   :  { %177 = shalt.err (!%p174_p10)
}
  0x1b   :  { %s178_s15 = scalar_lea.vmem %s34_s21, 16  ;;  %s182_s16 = scalar_lea.vmem %s34_s21, 32 }
  0x1c   :  { %p179_p11 = scmp.ne.s32.totalorder %s34_s21, %s178_s15  ;;  %p183_p12 = scmp.lt.s32.totalorder %s34_s21, %s34_s21 }
  0x1d   :  { %p184_p13 = scmp.lt.s32.totalorder %s182_s16, %s178_s15 }
  0x1f   :  { %p185_p0 = por %p184_p13, %p183_p12 }
  0x21   :  { %p186_p1 = pnand %p185_p0, %p179_p11 }
  0x23   :  { %189 = shalt.err (!%p186_p1)
}
  0x24   :  { %36 = dma.hbm_to_vmem [thread:$0]  %s369_s2, 16, %s34_s21, [#allocation6]  }
  0x25   :  { %256 = dma.done.wait [#allocation3], 16  }
  0x26   :  { %257 = vsyncadd [#allocation3], 4294967280 }
  0x27   :  { %258 = dma.done.wait [#allocation6], 16  }
  0x28   :  { %259 = vsyncadd [#allocation6], 4294967280  ;;  %v43_v0 = vld [vmem:[%s367_s0] sm:$0xff]  ;;  %v44_v7 = vld [vmem:[#allocation2] sm:$0x1]  ;;  %s266_s2 = smov [#allocation8]  }
  0x29   :  { %v46_v1 = vrot.slane %v43_v0, 4  ;;  %s109_s20 = sshll.u32 %s266_s2, 4  ;;  %v45_v13 = vld [vmem:[#allocation5] sm:$0x1]  ;;  %s110_s20 = int_to_ptr.vmem [resolvable:$true] %s109_s20 }
  0x2a   :  { %142 = vrcp.f32 %v45_v13  ;;  %s190_s0 = scalar_lea.vmem %s110_s20, 16  ;;  %s194_s21 = scalar_lea.vmem %s110_s20, 32 }
  0x2b   :  { %v47_v2 = vadd.f32 %v46_v1, %v43_v0  ;;  %p191_p2 = scmp.ne.s32.totalorder %s110_s20, %s190_s0  ;;  %p195_p3 = scmp.lt.s32.totalorder %s110_s20, %s110_s20 }
  0x2c   :  { %p196_p4 = scmp.lt.s32.totalorder %s194_s21, %s190_s0 }
  0x2d   :  { %v48_v3 = vrot.slane %v47_v2, 2 }
  0x2e   :  { %p197_p5 = por %p196_p4, %p195_p3 }
  0x2f   :  { %v49_v4 = vadd.f32 %v48_v3, %v47_v2 }
  0x30   :  { %p198_p6 = pnand %p197_p5, %p191_p2 }
  0x31   :  { %v50_v5 = vrot.slane %v49_v4, 1 }
  0x33   :  { %v51_v6 = vadd.f32 %v50_v5, %v49_v4 }
  0x35   :  { %v53_v8 = vmul.f32 0.125, %v51_v6 }
  0x37   :  { %v70_v9 = vsub.f32 %v53_v8, %v44_v7  ;;  %v326_v10 = vsub.f32 %v43_v0, %v53_v8 }
  0x39   :  { %v86_v11 = vmul.f32 0.1, %v70_v9  ;;  %v55_v12 = vmul.f32 %v326_v10, %v326_v10 }
  0x3b   :  { %v87_v14 = vadd.f32 %v86_v11, %v44_v7  ;;  %v56_v15 = vrot.slane %v55_v12, 4 }
  0x3d   :  { %88 = vst [vmem:[#allocation8] sm:$0x1] %v87_v14  ;;  %v57_v16 = vadd.f32 %v56_v15, %v55_v12 }
  0x3e   :  { %201 = shalt.err (!%p198_p6)
}
  0x3f   :  { %s202_s24 = scalar_lea.hbm %s371_s4, 16 }
  0x40   :  { %p203_p7 = scmp.ne.s32.totalorder %s371_s4, %s202_s24  ;;  %p206_p8 = scmp.lt.u32.totalorder %s202_s24, %s371_s4 }
  0x42   :  { %p208_p9 = pnand %p206_p8, %p203_p7 }
  0x44   :  { %211 = shalt.err (!%p208_p9)
}
  0x45   :  { %112 = dma.vmem_to_hbm [thread:$0]  %s110_s20, 16, %s371_s4, [#allocation9]   ;;  %v58_v17 = vrot.slane %v57_v16, 2  ;;  %v143_v22 = vpop.eup %142  ;;  %v75_v26 = vlaneseq }
  0x46   :  { %s267_s6 = smov [#allocation10]   ;;  %v71_v30 = vmul.f32 %v143_v22, %v70_v9 }
  0x47   :  { %v59_v18 = vadd.f32 %v58_v17, %v57_v16  ;;  %s119_s7 = sshll.u32 %s267_s6, 4  ;;  %v76_v31 = vshrl.u32 %v75_v26, 7  ;;  %s120_s7 = int_to_ptr.vmem [resolvable:$true] %s119_s7 }
  0x48   :  { %s212_s4 = scalar_lea.vmem %s120_s7, 16  ;;  %s216_s8 = scalar_lea.vmem %s120_s7, 32 }
  0x49   :  { %v60_v19 = vrot.slane %v59_v18, 1  ;;  %p213_p10 = scmp.ne.s32.totalorder %s120_s7, %s212_s4  ;;  %p217_p11 = scmp.lt.s32.totalorder %s120_s7, %s120_s7 }
  0x4a   :  { %p218_p12 = scmp.lt.s32.totalorder %s216_s8, %s212_s4 }
  0x4b   :  { %v61_v20 = vadd.f32 %v60_v19, %v59_v18 }
  0x4c   :  { %p219_p13 = por %p218_p12, %p217_p11 }
  0x4d   :  { %v62_v21 = vmul.f32 0.14285715, %v61_v20 }
  0x4e   :  { %p220_p0 = pnand %p219_p13, %p213_p10 }
  0x4f   :  { %v63_v23 = vadd.f32 1e-05, %v62_v21 }
  0x51   :  { %144 = vrcp.f32 %v63_v23  ;;  %v67_v24 = vmul.f32 %v143_v22, %v63_v23  ;;  %v89_v25 = vsub.f32 %v63_v23, %v45_v13 }
  0x53   :  { %v90_v27 = vmul.f32 0.1, %v89_v25  ;;  %v68_v28 = vmax.f32 %v67_v24, 0.8333333 }
  0x55   :  { %v91_v29 = vadd.f32 %v90_v27, %v45_v13  ;;  %v69_v32 = vmin.f32 %v68_v28, 1.2 }
  0x57   :  { %92 = vst [vmem:[#allocation10] sm:$0x1] %v91_v29 }
  0x58   :  { %223 = shalt.err (!%p220_p0)
}
  0x59   :  { %s224_s11 = scalar_lea.hbm %s372_s5, 16 }
  0x5a   :  { %p225_p1 = scmp.ne.s32.totalorder %s372_s5, %s224_s11  ;;  %p228_p2 = scmp.lt.u32.totalorder %s224_s11, %s372_s5 }
  0x5c   :  { %p230_p3 = pnand %p228_p2, %p225_p1 }
  0x5e   :  { %233 = shalt.err (!%p230_p3)
}
  0x5f   :  { %122 = dma.vmem_to_hbm [thread:$0]  %s120_s7, 16, %s372_s5, [#allocation9]   ;;  %v136_v33 = vclamps-f32 %v71_v30, 0.5  ;;  %v77_v34 = vsub.s32 0, %v76_v31  ;;  %v145_v35 = vpop.eup %144 }
  0x60   :  { %v74_v36 = vmul.f32 %v145_v35, %v69_v32  ;;  %s268_s17 = smov [#allocation7]  }
  0x61   :  { %v83_v38 = vrot.slane %v136_v33, %v77_v34  ;;  %s99_s18 = sshll.u32 %s268_s17, 4  ;;  %s100_s18 = int_to_ptr.vmem [resolvable:$true] %s99_s18 }
  0x62   :  { %v78_v37 = vrot.slane %v74_v36, %v77_v34  ;;  %s234_s19 = scalar_lea.vmem %s100_s18, 128  ;;  %p239_p5 = scmp.lt.s32.totalorder %s100_s18, %s100_s18 }
  0x63   :  { %p235_p4 = scmp.ne.s32.totalorder %s100_s18, %s234_s19  ;;  %p240_p6 = scmp.lt.s32.totalorder %s234_s19, %s234_s19 }
  0x64   :  { %v79_v39 = vmul.f32 %v78_v37, %v326_v10 }
  0x65   :  { %p241_p7 = por %p240_p6, %p239_p5 }
  0x66   :  { %v84_v40 = vadd.f32 %v83_v38, %v79_v39 }
  0x67   :  { %p242_p8 = pnand %p241_p7, %p235_p4 }
  0x68   :  { %85 = vst [vmem:[#allocation7] sm:$0xff] %v84_v40 }
  0x69   :  { %245 = shalt.err (!%p242_p8)
}
  0x6a   :  { %s246_s20 = scalar_lea.hbm %s370_s3, 128 }
  0x6b   :  { %p247_p9 = scmp.ne.s32.totalorder %s370_s3, %s246_s20  ;;  %p250_p10 = scmp.lt.u32.totalorder %s246_s20, %s370_s3 }
  0x6d   :  { %p252_p11 = pnand %p250_p10, %p247_p9 }
  0x6f   :  { %255 = shalt.err (!%p252_p11)
}
  0x70   :  { %102 = dma.vmem_to_hbm [thread:$0]  %s100_s18, 128, %s370_s3, [#allocation4]  }
  0x71   :  { %260 = dma.done.wait [#allocation4], 128  }
  0x72   :  { %261 = vsyncadd [#allocation4], 4294967168 }
  0x73   :  { %262 = dma.done.wait [#allocation9], 32  }
  0x74   :  { %263 = vsyncadd [#allocation9], 4294967264 }
  0x75   :  { %132 = vsyncpa [#allocation3], 1 }
  0x76   :  { %133 = vsyncpa [#allocation6], 1 }
  0x77   :  { %134 = vsyncpa [#allocation4], 1 }
  0x78   :  { %135 = vsyncpa [#allocation9], 1 }

</bundles_post_ra>
